<compile_context>
chip_gen: v5e
topology: v5e:2x2
jax: 0.10.0
libtpu: 0.0.40
codegen_flags: <defaults>
</compile_context>

<pallas_src>
import functools

import jax
import jax.numpy as jnp
from jax import lax
from jax.experimental import pallas as pl
from jax.experimental.pallas import tpu as pltpu

SMOOTH_NR = 1e-5
SMOOTH_DR = 1e-5
LAMBDA_CE = 1.0

_LANE = 128
_SUB_MAX = 512                           # lanes per inner-loop step (kept in vregs)
_TARGET_BLOCK_BYTES = 2 * 1024 * 1024    # ~2 MiB per input block


def _round_up(x, m):
    return ((x + m - 1) // m) * m


def _cdiv(a, b):
    return (a + b - 1) // b


def _fold_to_lanes(a):
    """Sum (..., k*128) down to (..., 128) using lane-aligned static slices (pure VPU adds)."""
    k = a.shape[-1] // _LANE
    r = a[..., :_LANE]
    for j in range(1, k):
        r = r + a[..., j * _LANE:(j + 1) * _LANE]
    return r


def _gdice_ce_partials_kernel(x_ref, t_ref,
                              inter_ref, ground_ref, pred_ref, lse_ref,
                              *, n_b, n_c, n_s, tile_s, sub_s, tiles_per_core):
    """Accumulate per-(b,c) dice partial sums and the CE weighted-LSE partial sum.

    x_ref / t_ref are (B*C, tile_s) blocks of logits / targets. Accumulators are
    lane-shaped and live in the output VMEM blocks, which stay resident across
    the 'arbitrary' grid axis; cross-lane reduction and the tiny dice/CE math
    happen in the JAX wrapper.
    """
    step = pl.program_id(1)

    @pl.when(step == 0)
    def _init():
        inter_ref[...] = jnp.zeros_like(inter_ref)
        ground_ref[...] = jnp.zeros_like(ground_ref)
        pred_ref[...] = jnp.zeros_like(pred_ref)
        lse_ref[...] = jnp.zeros_like(lse_ref)

    bc = n_b * n_c
    tile_id = pl.program_id(0) * tiles_per_core + step
    tile_start = tile_id * tile_s
    lane_iota = lax.broadcasted_iota(jnp.int32, (1, sub_s), 1)

    def body(j, carry):
        inter_p, ground_p, pred_p, lse_p = carry
        off = pl.multiple_of(j * sub_s, sub_s)

        x = x_ref[:, pl.ds(off, sub_s)].astype(jnp.float32)   # (BC, sub) logits
        t = t_ref[:, pl.ds(off, sub_s)].astype(jnp.float32)   # (BC, sub) targets

        # Mask the spatial tail (and fully-out-of-range revisit tiles): Pallas does
        # not zero out-of-bounds block contents, so garbage lanes must never reach
        # the accumulators (or the exp/log below).
        valid = (lane_iota + (tile_start + off)) < n_s          # (1, sub)
        x = jnp.where(valid, x, 0.0)
        t = jnp.where(valid, t, 0.0)

        # --- GeneralizedDice partial sums (per (b,c), 128-lane column partials) ---
        inter_p = inter_p + _fold_to_lanes(x * t)                # sum(t*x)
        ground_p = ground_p + _fold_to_lanes(t)                  # sum(t)
        pred_p = pred_p + _fold_to_lanes(x)                      # sum(x)

        # --- CE partial: per-pixel log-sum-exp over channels, weighted by sum_c(t) ---
        xb = x.reshape(n_b, n_c, sub_s)
        m = jnp.max(xb, axis=1)                                  # (B, sub)
        se = jnp.sum(jnp.exp(xb - m[:, None, :]), axis=1)        # (B, sub)
        lse = jnp.log(se) + m                                    # (B, sub)
        tsum = jnp.sum(t.reshape(n_b, n_c, sub_s), axis=1)       # (B, sub)
        lse_p = lse_p + _fold_to_lanes(tsum * lse)
        return inter_p, ground_p, pred_p, lse_p

    carry0 = (jnp.zeros((bc, _LANE), jnp.float32),
              jnp.zeros((bc, _LANE), jnp.float32),
              jnp.zeros((bc, _LANE), jnp.float32),
              jnp.zeros((n_b, _LANE), jnp.float32))
    inter_p, ground_p, pred_p, lse_p = lax.fori_loop(0, tile_s // sub_s, body, carry0)

    inter_ref[...] += inter_p[None]
    ground_ref[...] += ground_p[None]
    pred_ref[...] += pred_p[None]
    lse_ref[...] += lse_p[None]


@jax.jit
def gdice_ce_loss(logits_nchw, target_nchw):
    """GeneralizedDiceLoss + lambda_ce * CrossEntropyLoss (module defaults)."""
    B, C, H, W = logits_nchw.shape
    S = H * W
    BC = B * C

    # Free views (no HBM copies): fold B into the sublane axis; keep target's native dtype.
    x = logits_nchw.reshape(BC, S)
    t = target_nchw.reshape(BC, S)

    # --- tiling ---
    sub = min(_SUB_MAX, _round_up(S, _LANE))               # inner lane chunk, multiple of 128
    n_sub_per_tile = max(1, _TARGET_BLOCK_BYTES // (BC * 4 * sub))
    ts = sub * min(n_sub_per_tile, _cdiv(S, sub))          # ~2 MiB input blocks
    n_tiles = _cdiv(S, ts)
    n_cores = 2 if n_tiles >= 2 else 1                     # v7x: split sweep across both TCs
    tiles_per_core = _cdiv(n_tiles, n_cores)

    def in_map(c, s):
        # Clamp: an overflow step (odd n_tiles) re-reads the last tile; its
        # contribution is fully masked out in the kernel.
        return (0, jnp.minimum(c * tiles_per_core + s, n_tiles - 1))

    kernel = functools.partial(
        _gdice_ce_partials_kernel,
        n_b=B, n_c=C, n_s=S, tile_s=ts, sub_s=sub, tiles_per_core=tiles_per_core)

    acc_spec = pl.BlockSpec((1, BC, _LANE), lambda c, s: (c, 0, 0))
    lse_spec = pl.BlockSpec((1, B, _LANE), lambda c, s: (c, 0, 0))

    block_bytes = BC * ts * 4
    vmem_limit = int(min(100 * 1024 * 1024, max(32 * 1024 * 1024, 6 * block_bytes)))

    cost = pl.CostEstimate(
        flops=12 * BC * S,
        transcendentals=(C + 1) * B * S,
        bytes_accessed=int(BC * S * (4 + jnp.dtype(t.dtype).itemsize)
                           + 4 * n_cores * (3 * BC + B) * _LANE),
    )

    inter_p, ground_p, pred_p, lse_p = pl.pallas_call(
        kernel,
        out_shape=(
            jax.ShapeDtypeStruct((n_cores, BC, _LANE), jnp.float32),
            jax.ShapeDtypeStruct((n_cores, BC, _LANE), jnp.float32),
            jax.ShapeDtypeStruct((n_cores, BC, _LANE), jnp.float32),
            jax.ShapeDtypeStruct((n_cores, B, _LANE), jnp.float32),
        ),
        grid=(n_cores, tiles_per_core),
        in_specs=[
            pl.BlockSpec((BC, ts), in_map),
            pl.BlockSpec((BC, ts), in_map),
        ],
        out_specs=(acc_spec, acc_spec, acc_spec, lse_spec),
        compiler_params=pltpu.CompilerParams(
            dimension_semantics=("parallel", "arbitrary"),
            vmem_limit_bytes=vmem_limit,
        ),
        cost_estimate=cost,
    )(x, t)

    # --- tiny finalize in plain JAX (reduce cores + lane partials, dice/CE math) ---
    inter = jnp.sum(inter_p, axis=(0, 2)).reshape(B, C)
    ground = jnp.sum(ground_p, axis=(0, 2)).reshape(B, C)
    pred = jnp.sum(pred_p, axis=(0, 2)).reshape(B, C)
    lse_sum = jnp.sum(lse_p)

    # GeneralizedDiceLoss: include_background=True, w_type=SQUARE, batch=False, MEAN.
    w = 1.0 / (ground * ground)
    infs = jnp.isinf(w)
    w = jnp.where(infs, 0.0, w)
    w = jnp.where(infs, jnp.max(w, axis=1, keepdims=True), w)
    numer = 2.0 * jnp.sum(inter * w, axis=1) + SMOOTH_NR
    denom = jnp.sum((ground + pred) * w, axis=1) + SMOOTH_DR
    gdice = jnp.mean(1.0 - numer / denom)

    # CrossEntropyLoss (float/probability targets, reduction='mean' over B*H*W):
    #   -sum(t*(x - lse)) / (B*S) == (sum((sum_c t)*lse) - sum(t*x)) / (B*S)
    ce = (lse_sum - jnp.sum(inter)) / (B * S)

    return gdice + LAMBDA_CE * ce


def _reference_loss(logits_nchw, target_nchw):
    """Pure-JAX reference of the PyTorch module with its default config."""
    B, C = logits_nchw.shape[:2]
    x = logits_nchw.reshape(B, C, -1).astype(jnp.float32)
    t = target_nchw.reshape(B, C, -1).astype(jnp.float32)
    inter = jnp.sum(t * x, axis=-1)
    g = jnp.sum(t, axis=-1)
    p = jnp.sum(x, axis=-1)
    w = 1.0 / (g * g)
    infs = jnp.isinf(w)
    w = jnp.where(infs, 0.0, w)
    w = jnp.where(infs, jnp.max(w, axis=1, keepdims=True), w)
    numer = 2.0 * jnp.sum(inter * w, axis=1) + SMOOTH_NR
    denom = jnp.sum((g + p) * w, axis=1) + SMOOTH_DR
    gdice = jnp.mean(1.0 - numer / denom)
    ce = -jnp.sum(t * jax.nn.log_softmax(x, axis=1)) / (B * x.shape[-1])
    return gdice + LAMBDA_CE * ce


if __name__ == "__main__":
    key = jax.random.PRNGKey(0)
    k1, k2 = jax.random.split(key)
    B, C, H, W = 2, 4, 16, 16

    logits = jax.random.normal(k1, (B, C, H, W), dtype=jnp.float32)
    labels = jax.random.randint(k2, (B, H, W), 0, C)
    target = jax.nn.one_hot(labels, C, axis=1, dtype=jnp.float32)   # (B, C, H, W)

    loss = gdice_ce_loss(logits, target)
    jax.block_until_ready(loss)

    ref = _reference_loss(logits, target)
    assert jnp.allclose(loss, ref, rtol=1e-3, atol=1e-3), (float(loss), float(ref))
    print("KERNEL_OK")
</pallas_src>

<mosaic_0001>
module attributes {stable_mosaic.version = 11 : i64} {
  func.func @_gdice_ce_partials_kernel(%arg0: i32, %arg1: i32, %arg2: memref<8x256xf32, #tpu.memory_space<vmem>>, %arg3: memref<8x256xf32, #tpu.memory_space<vmem>>, %arg4: memref<1x8x128xf32, #tpu.memory_space<vmem>>, %arg5: memref<1x8x128xf32, #tpu.memory_space<vmem>>, %arg6: memref<1x8x128xf32, #tpu.memory_space<vmem>>, %arg7: memref<1x2x128xf32, #tpu.memory_space<vmem>>) attributes {dimension_semantics = [#tpu.dimension_semantics<parallel>, #tpu.dimension_semantics<arbitrary>], iteration_bounds = array<i64: 1, 1>, scalar_prefetch = 0 : i64, scratch_operands = 0 : i64, tpu.core_type = #tpu.core_type<tc>, window_params = [{transform_indices = @transform_0, window_bounds = array<i64: 8, 256>}, {transform_indices = @transform_1, window_bounds = array<i64: 8, 256>}, {transform_indices = @transform_2, window_bounds = array<i64: 1, 8, 128>}, {transform_indices = @transform_3, window_bounds = array<i64: 1, 8, 128>}, {transform_indices = @transform_4, window_bounds = array<i64: 1, 8, 128>}, {transform_indices = @transform_5, window_bounds = array<i64: 1, 2, 128>}]} {
    %c0_i32 = arith.constant 0 : i32
    %0 = arith.cmpi eq, %arg1, %c0_i32 : i32
    %1 = arith.extui %0 : i1 to i32
    %c0_i32_0 = arith.constant 0 : i32
    %2 = arith.cmpi ne, %1, %c0_i32_0 : i32
    scf.if %2 {
      %cst_38 = arith.constant 0.000000e+00 : f32
      %75 = vector.broadcast %cst_38 : f32 to vector<1x8x128xf32>
      %c0_39 = arith.constant 0 : index
      %c0_40 = arith.constant 0 : index
      %c0_41 = arith.constant 0 : index
      %76 = vector.load %arg4[%c0_39, %c0_40, %c0_41] : memref<1x8x128xf32, #tpu.memory_space<vmem>>, vector<1x8x128xf32>
      tpu.vector_store %arg4[%c0_39, %c0_40, %c0_41], %75 {strides = array<i32>} : memref<1x8x128xf32, #tpu.memory_space<vmem>>, vector<1x8x128xf32>,
      %cst_42 = arith.constant 0.000000e+00 : f32
      %77 = vector.broadcast %cst_42 : f32 to vector<1x8x128xf32>
      %c0_43 = arith.constant 0 : index
      %c0_44 = arith.constant 0 : index
      %c0_45 = arith.constant 0 : index
      %78 = vector.load %arg5[%c0_43, %c0_44, %c0_45] : memref<1x8x128xf32, #tpu.memory_space<vmem>>, vector<1x8x128xf32>
      tpu.vector_store %arg5[%c0_43, %c0_44, %c0_45], %77 {strides = array<i32>} : memref<1x8x128xf32, #tpu.memory_space<vmem>>, vector<1x8x128xf32>,
      %cst_46 = arith.constant 0.000000e+00 : f32
      %79 = vector.broadcast %cst_46 : f32 to vector<1x8x128xf32>
      %c0_47 = arith.constant 0 : index
      %c0_48 = arith.constant 0 : index
      %c0_49 = arith.constant 0 : index
      %80 = vector.load %arg6[%c0_47, %c0_48, %c0_49] : memref<1x8x128xf32, #tpu.memory_space<vmem>>, vector<1x8x128xf32>
      tpu.vector_store %arg6[%c0_47, %c0_48, %c0_49], %79 {strides = array<i32>} : memref<1x8x128xf32, #tpu.memory_space<vmem>>, vector<1x8x128xf32>,
      %cst_50 = arith.constant 0.000000e+00 : f32
      %81 = vector.broadcast %cst_50 : f32 to vector<1x2x128xf32>
      %c0_51 = arith.constant 0 : index
      %c0_52 = arith.constant 0 : index
      %c0_53 = arith.constant 0 : index
      %82 = vector.load %arg7[%c0_51, %c0_52, %c0_53] : memref<1x2x128xf32, #tpu.memory_space<vmem>>, vector<1x2x128xf32>
      tpu.vector_store %arg7[%c0_51, %c0_52, %c0_53], %81 {strides = array<i32>} : memref<1x2x128xf32, #tpu.memory_space<vmem>>, vector<1x2x128xf32>,
    } else {
    }
    %c1_i32 = arith.constant 1 : i32
    %3 = arith.muli %arg0, %c1_i32 : i32
    %4 = arith.addi %3, %arg1 : i32
    %c256_i32 = arith.constant 256 : i32
    %5 = arith.muli %4, %c256_i32 : i32
    %6 = tpu.iota {dimensions = array<i32: 1>} : vector<1x256xi32>
    %cst = arith.constant 0.000000e+00 : f32
    %7 = vector.broadcast %cst : f32 to vector<8x128xf32>
    %cst_1 = arith.constant 0.000000e+00 : f32
    %8 = vector.broadcast %cst_1 : f32 to vector<8x128xf32>
    %cst_2 = arith.constant 0.000000e+00 : f32
    %9 = vector.broadcast %cst_2 : f32 to vector<8x128xf32>
    %cst_3 = arith.constant 0.000000e+00 : f32
    %10 = vector.broadcast %cst_3 : f32 to vector<2x128xf32>
    %c0_i32_4 = arith.constant 0 : i32
    %c256_i32_5 = arith.constant 256 : i32
    %11 = arith.muli %c0_i32_4, %c256_i32_5 : i32
    %12 = tpu.assume_multiple %11, 256 : i32
    %c0 = arith.constant 0 : index
    %13 = arith.index_cast %12 : i32 to index
    %14 = vector.load %arg2[%c0, %13] : memref<8x256xf32, #tpu.memory_space<vmem>>, vector<8x256xf32>
    %c0_6 = arith.constant 0 : index
    %15 = arith.index_cast %12 : i32 to index
    %16 = vector.load %arg3[%c0_6, %15] : memref<8x256xf32, #tpu.memory_space<vmem>>, vector<8x256xf32>
    %17 = arith.addi %5, %12 : i32
    %18 = vector.broadcast %17 : i32 to vector<1x256xi32>
    %19 = arith.addi %6, %18 : vector<1x256xi32>
    %c256_i32_7 = arith.constant 256 : i32
    %20 = vector.broadcast %c256_i32_7 : i32 to vector<1x256xi32>
    %21 = arith.cmpi slt, %19, %20 : vector<1x256xi32>
    %cst_8 = arith.constant 0.000000e+00 : f32
    %22 = vector.shape_cast %21 : vector<1x256xi1> to vector<1x256xi1>
    %23 = vector.broadcast %22 : vector<1x256xi1> to vector<8x256xi1>
    %24 = vector.broadcast %cst_8 : f32 to vector<8x256xf32>
    %25 = arith.select %23, %14, %24 : vector<8x256xi1>, vector<8x256xf32>
    %cst_9 = arith.constant 0.000000e+00 : f32
    %26 = vector.shape_cast %21 : vector<1x256xi1> to vector<1x256xi1>
    %27 = vector.broadcast %26 : vector<1x256xi1> to vector<8x256xi1>
    %28 = vector.broadcast %cst_9 : f32 to vector<8x256xf32>
    %29 = arith.select %27, %16, %28 : vector<8x256xi1>, vector<8x256xf32>
    %30 = arith.mulf %25, %29 : vector<8x256xf32>
    %31 = vector.extract_strided_slice %30 {offsets = [0, 0], sizes = [8, 128], strides = [1, 1]} : vector<8x256xf32> to vector<8x128xf32>
    %32 = vector.extract_strided_slice %30 {offsets = [0, 128], sizes = [8, 128], strides = [1, 1]} : vector<8x256xf32> to vector<8x128xf32>
    %33 = arith.addf %31, %32 : vector<8x128xf32>
    %34 = arith.addf %7, %33 : vector<8x128xf32>
    %35 = vector.extract_strided_slice %29 {offsets = [0, 0], sizes = [8, 128], strides = [1, 1]} : vector<8x256xf32> to vector<8x128xf32>
    %36 = vector.extract_strided_slice %29 {offsets = [0, 128], sizes = [8, 128], strides = [1, 1]} : vector<8x256xf32> to vector<8x128xf32>
    %37 = arith.addf %35, %36 : vector<8x128xf32>
    %38 = arith.addf %8, %37 : vector<8x128xf32>
    %39 = vector.extract_strided_slice %25 {offsets = [0, 0], sizes = [8, 128], strides = [1, 1]} : vector<8x256xf32> to vector<8x128xf32>
    %40 = vector.extract_strided_slice %25 {offsets = [0, 128], sizes = [8, 128], strides = [1, 1]} : vector<8x256xf32> to vector<8x128xf32>
    %41 = arith.addf %39, %40 : vector<8x128xf32>
    %42 = arith.addf %9, %41 : vector<8x128xf32>
    %43 = vector.shape_cast %25 : vector<8x256xf32> to vector<2x4x256xf32>
    %cst_10 = arith.constant dense<0xFF800000> : vector<2x256xf32>
    %44 = vector.multi_reduction <maximumf>, %43, %cst_10 [1] : vector<2x4x256xf32> to vector<2x256xf32>
    %45 = vector.shape_cast %44 : vector<2x256xf32> to vector<2x1x256xf32>
    %46 = vector.broadcast %45 : vector<2x1x256xf32> to vector<2x4x256xf32>
    %47 = arith.subf %43, %46 : vector<2x4x256xf32>
    %48 = math.exp %47 : vector<2x4x256xf32>
    %cst_11 = arith.constant dense<0.000000e+00> : vector<2x256xf32>
    %49 = vector.multi_reduction <add>, %48, %cst_11 [1] : vector<2x4x256xf32> to vector<2x256xf32>
    %50 = math.log %49 : vector<2x256xf32>
    %51 = arith.addf %50, %44 : vector<2x256xf32>
    %52 = vector.shape_cast %29 : vector<8x256xf32> to vector<2x4x256xf32>
    %cst_12 = arith.constant dense<0.000000e+00> : vector<2x256xf32>
    %53 = vector.multi_reduction <add>, %52, %cst_12 [1] : vector<2x4x256xf32> to vector<2x256xf32>
    %54 = arith.mulf %53, %51 : vector<2x256xf32>
    %55 = vector.extract_strided_slice %54 {offsets = [0, 0], sizes = [2, 128], strides = [1, 1]} : vector<2x256xf32> to vector<2x128xf32>
    %56 = vector.extract_strided_slice %54 {offsets = [0, 128], sizes = [2, 128], strides = [1, 1]} : vector<2x256xf32> to vector<2x128xf32>
    %57 = arith.addf %55, %56 : vector<2x128xf32>
    %58 = arith.addf %10, %57 : vector<2x128xf32>
    %c1_i32_13 = arith.constant 1 : i32
    %c0_14 = arith.constant 0 : index
    %c0_15 = arith.constant 0 : index
    %c0_16 = arith.constant 0 : index
    %59 = vector.load %arg4[%c0_14, %c0_15, %c0_16] : memref<1x8x128xf32, #tpu.memory_space<vmem>>, vector<1x8x128xf32>
    %60 = vector.shape_cast %34 : vector<8x128xf32> to vector<1x8x128xf32>
    %61 = arith.addf %59, %60 : vector<1x8x128xf32>
    %c0_17 = arith.constant 0 : index
    %c0_18 = arith.constant 0 : index
    %c0_19 = arith.constant 0 : index
    %62 = vector.load %arg4[%c0_17, %c0_18, %c0_19] : memref<1x8x128xf32, #tpu.memory_space<vmem>>, vector<1x8x128xf32>
    tpu.vector_store %arg4[%c0_17, %c0_18, %c0_19], %61 {strides = array<i32>} : memref<1x8x128xf32, #tpu.memory_space<vmem>>, vector<1x8x128xf32>,
    %c0_20 = arith.constant 0 : index
    %c0_21 = arith.constant 0 : index
    %c0_22 = arith.constant 0 : index
    %63 = vector.load %arg5[%c0_20, %c0_21, %c0_22] : memref<1x8x128xf32, #tpu.memory_space<vmem>>, vector<1x8x128xf32>
    %64 = vector.shape_cast %38 : vector<8x128xf32> to vector<1x8x128xf32>
    %65 = arith.addf %63, %64 : vector<1x8x128xf32>
    %c0_23 = arith.constant 0 : index
    %c0_24 = arith.constant 0 : index
    %c0_25 = arith.constant 0 : index
    %66 = vector.load %arg5[%c0_23, %c0_24, %c0_25] : memref<1x8x128xf32, #tpu.memory_space<vmem>>, vector<1x8x128xf32>
    tpu.vector_store %arg5[%c0_23, %c0_24, %c0_25], %65 {strides = array<i32>} : memref<1x8x128xf32, #tpu.memory_space<vmem>>, vector<1x8x128xf32>,
    %c0_26 = arith.constant 0 : index
    %c0_27 = arith.constant 0 : index
    %c0_28 = arith.constant 0 : index
    %67 = vector.load %arg6[%c0_26, %c0_27, %c0_28] : memref<1x8x128xf32, #tpu.memory_space<vmem>>, vector<1x8x128xf32>
    %68 = vector.shape_cast %42 : vector<8x128xf32> to vector<1x8x128xf32>
    %69 = arith.addf %67, %68 : vector<1x8x128xf32>
    %c0_29 = arith.constant 0 : index
    %c0_30 = arith.constant 0 : index
    %c0_31 = arith.constant 0 : index
    %70 = vector.load %arg6[%c0_29, %c0_30, %c0_31] : memref<1x8x128xf32, #tpu.memory_space<vmem>>, vector<1x8x128xf32>
    tpu.vector_store %arg6[%c0_29, %c0_30, %c0_31], %69 {strides = array<i32>} : memref<1x8x128xf32, #tpu.memory_space<vmem>>, vector<1x8x128xf32>,
    %c0_32 = arith.constant 0 : index
    %c0_33 = arith.constant 0 : index
    %c0_34 = arith.constant 0 : index
    %71 = vector.load %arg7[%c0_32, %c0_33, %c0_34] : memref<1x2x128xf32, #tpu.memory_space<vmem>>, vector<1x2x128xf32>
    %72 = vector.shape_cast %58 : vector<2x128xf32> to vector<1x2x128xf32>
    %73 = arith.addf %71, %72 : vector<1x2x128xf32>
    %c0_35 = arith.constant 0 : index
    %c0_36 = arith.constant 0 : index
    %c0_37 = arith.constant 0 : index
    %74 = vector.load %arg7[%c0_35, %c0_36, %c0_37] : memref<1x2x128xf32, #tpu.memory_space<vmem>>, vector<1x2x128xf32>
    tpu.vector_store %arg7[%c0_35, %c0_36, %c0_37], %73 {strides = array<i32>} : memref<1x2x128xf32, #tpu.memory_space<vmem>>, vector<1x2x128xf32>,
    return
  }
  func.func @transform_0(%arg0: i32, %arg1: i32) -> (i32, i32) {
    %c1_i32 = arith.constant 1 : i32
    %0 = arith.muli %arg0, %c1_i32 : i32
    %1 = arith.addi %0, %arg1 : i32
    %c0_i32 = arith.constant 0 : i32
    %2 = arith.minsi %1, %c0_i32 : i32
    %c0_i32_0 = arith.constant 0 : i32
    %c0_i32_1 = arith.constant 0 : i32
    return %c0_i32_0, %2 : i32, i32
  }
  func.func @transform_1(%arg0: i32, %arg1: i32) -> (i32, i32) {
    %c1_i32 = arith.constant 1 : i32
    %0 = arith.muli %arg0, %c1_i32 : i32
    %1 = arith.addi %0, %arg1 : i32
    %c0_i32 = arith.constant 0 : i32
    %2 = arith.minsi %1, %c0_i32 : i32
    %c0_i32_0 = arith.constant 0 : i32
    %c0_i32_1 = arith.constant 0 : i32
    return %c0_i32_0, %2 : i32, i32
  }
  func.func @transform_2(%arg0: i32, %arg1: i32) -> (i32, i32, i32) {
    %c0_i32 = arith.constant 0 : i32
    %c0_i32_0 = arith.constant 0 : i32
    %c0_i32_1 = arith.constant 0 : i32
    return %arg0, %c0_i32, %c0_i32_0 : i32, i32, i32
  }
  func.func @transform_3(%arg0: i32, %arg1: i32) -> (i32, i32, i32) {
    %c0_i32 = arith.constant 0 : i32
    %c0_i32_0 = arith.constant 0 : i32
    %c0_i32_1 = arith.constant 0 : i32
    return %arg0, %c0_i32, %c0_i32_0 : i32, i32, i32
  }
  func.func @transform_4(%arg0: i32, %arg1: i32) -> (i32, i32, i32) {
    %c0_i32 = arith.constant 0 : i32
    %c0_i32_0 = arith.constant 0 : i32
    %c0_i32_1 = arith.constant 0 : i32
    return %arg0, %c0_i32, %c0_i32_0 : i32, i32, i32
  }
  func.func @transform_5(%arg0: i32, %arg1: i32) -> (i32, i32, i32) {
    %c0_i32 = arith.constant 0 : i32
    %c0_i32_0 = arith.constant 0 : i32
    %c0_i32_1 = arith.constant 0 : i32
    return %arg0, %c0_i32, %c0_i32_0 : i32, i32, i32
  }
}

</mosaic_0001>

<bundles_post_ra>
// kernel: gdice_ce_loss.1
= control target key start
LH: loop header
LB: loop body
LE: loop exit
PB: predicated region body
PF: predicated region fallthrough
CT: control target
= control target key end

     0   :  { %vm121_vm0 = vcmask 1043456   ;;  %v346_v50 = vmov 0.0   ;;  %vm300_vm1 = vcmask 1041409   ;;  %s441_s0 = inlined_call_operand.vmem [shape: f32[8,256], index: 0, kind: input, shape index: {}]   ;;  %s442_s1 = inlined_call_operand.vmem [shape: f32[8,256], index: 1, kind: input, shape index: {}]   ;;  %s443_s5 = inlined_call_operand.vmem [shape: f32[1,2,128], index: 5, kind: output, shape index: {3}]   ;;  %s444_s3 = inlined_call_operand.vmem [shape: f32[1,8,128], index: 3, kind: output, shape index: {1}]   ;;  %s445_s2 = inlined_call_operand.vmem [shape: f32[1,8,128], index: 2, kind: output, shape index: {0}]   ;;  %s446_s4 = inlined_call_operand.vmem [shape: f32[1,8,128], index: 4, kind: output, shape index: {2}]  }
   0x1   :  { %v92_v0 = vld [vmem:[%s441_s0] sm:$0xff]  ;;  %v93_v1 = vld [vmem:[%s441_s0 + $0x8] sm:$0xff]  ;;  %86 = vst [vmem:[%s443_s5] sm:$0x3] %v346_v50 }
   0x2   :  { %v120_v2 = vrot.slane %v93_v1, 4  ;;  %v94_v45 = vld [vmem:[%s442_s1] sm:$0xff]  ;;  %v95_v46 = vld [vmem:[%s442_s1 + $0x8] sm:$0xff]  ;;  %v116_v52 = vadd.f32 %v93_v1, %v92_v0 }
   0x3   :  { %v110_v47 = vmul.f32 %v94_v45, %v92_v0  ;;  %v111_v48 = vmul.f32 %v95_v46, %v93_v1  ;;  %v114_v51 = vadd.f32 %v95_v46, %v94_v45  ;;  %v237_v55 = vrot.slane %v95_v46, 4 }
   0x4   :  { %v122_v3 = vsel %vm121_vm0, %v92_v0, %v120_v2  ;;  %v123_v4 = vsel %vm121_vm0, %v120_v2, %v92_v0  ;;  %296 = vst [vmem:[%s446_s4] sm:$0xff] %v116_v52 }
   0x5   :  { %127 = vst [vmem:[#allocation1] ss:$2 sm:$0xff] %v122_v3  ;;  %v124_v5 = vrot.slane %v123_v4, 4  ;;  %v112_v53 = vadd.f32 %v111_v48, %v110_v47  ;;  %v239_v57 = vsel %vm121_vm0, %v237_v55, %v94_v45  ;;  %v238_v58 = vsel %vm121_vm0, %v94_v45, %v237_v55 }
   0x6   :  { %293 = vst [vmem:[%s444_s3] sm:$0xff] %v114_v51  ;;  %v240_v59 = vrot.slane %v239_v57, 4 }
   0x7   :  { %131 = vst [vmem:[#allocation1 + $0x10] ss:$2 sm:$0xff] %v124_v5 }
   0x8   :  { %290 = vst [vmem:[%s445_s2] sm:$0xff] %v112_v53 }
   0xc   :  { %v128_v6 = vld.sshfl [vmem:[#allocation1] sm:$0xff pattern:$0x75316420]  ;;  %v129_v7 = vld.sshfl [vmem:[#allocation1 + $0x8] sm:$0xff pattern:$0x75316420] }
   0xd   :  { %v138_v8 = vsel %vm121_vm0, %v128_v6, -inf  ;;  %v145_v9 = vsel %vm121_vm0, %v129_v7, -inf }
   0xe   :  { %v139_v10 = vrot.slane %v138_v8, 4  ;;  %v146_v11 = vrot.slane %v145_v9, 4  ;;  %v132_v12 = vld.sshfl [vmem:[#allocation1 + $0x10] sm:$0xff pattern:$0x75316420] }
   0xf   :  { %v133_v13 = vld.sshfl [vmem:[#allocation1 + $0x18] sm:$0xff pattern:$0x75316420]  ;;  %v152_v14 = vsel %vm121_vm0, %v132_v12, -inf }
  0x10   :  { %v140_v15 = vmax.f32 %v138_v8, %v139_v10  ;;  %v147_v16 = vmax.f32 %v145_v9, %v146_v11  ;;  %v153_v17 = vrot.slane %v152_v14, 4  ;;  %v159_v18 = vsel %vm121_vm0, %v133_v13, -inf }
  0x11   :  { %v160_v19 = vrot.slane %v159_v18, 4 }
  0x12   :  { %v141_v20 = vrot.slane %v140_v15, 2  ;;  %v148_v21 = vrot.slane %v147_v16, 2  ;;  %v154_v22 = vmax.f32 %v152_v14, %v153_v17 }
  0x13   :  { %v161_v23 = vmax.f32 %v159_v18, %v160_v19 }
  0x14   :  { %v142_v24 = vmax.f32 %v140_v15, %v141_v20  ;;  %v149_v25 = vmax.f32 %v147_v16, %v148_v21  ;;  %v155_v26 = vrot.slane %v154_v22, 2 }
  0x15   :  { %v162_v27 = vrot.slane %v161_v23, 2 }
  0x16   :  { %v143_v28 = vrot.slane %v142_v24, 1  ;;  %v150_v29 = vrot.slane %v149_v25, 1  ;;  %v156_v30 = vmax.f32 %v154_v22, %v155_v26 }
  0x17   :  { %v163_v31 = vmax.f32 %v161_v23, %v162_v27 }
  0x18   :  { %v389_v32 = vmax.f32 %v149_v25, %v150_v29  ;;  %v157_v33 = vrot.slane %v156_v30, 1  ;;  %v391_v35 = vmax.f32 %v142_v24, %v143_v28 }
  0x19   :  { %v164_v34 = vrot.slane %v163_v31, 1 }
  0x1a   :  { %v170_v36 = vrot.slane %v389_v32, 4  ;;  %v398_v40 = vmax.f32 %v156_v30, %v157_v33 }
  0x1b   :  { %v394_v37 = vmax.f32 %v163_v31, %v164_v34 }
  0x1c   :  { %v172_v38 = vsel %vm121_vm0, %v391_v35, %v170_v36 }
  0x1d   :  { %v176_v39 = vsub.f32 %v122_v3, %v172_v38  ;;  %v171_v41 = vrot.slane %v394_v37, 4 }
  0x1f   :  { %v178_v42 = vmul.f32 1.442695, %v176_v39  ;;  %v173_v43 = vsel %vm121_vm0, %v398_v40, %v171_v41 }
  0x20   :  { %v177_v44 = vsub.f32 %v124_v5, %v173_v43 }
  0x21   :  { %334 = vpow2.f32 %v178_v42 }
  0x22   :  { %v180_v49 = vmul.f32 1.442695, %v177_v44 }
  0x24   :  { %336 = vpow2.f32 %v180_v49 }
  0x27   :  { %v335_v54 = vpop.eup %334 }
  0x28   :  { %184 = vst [vmem:[#allocation1] ss:$2 sm:$0xff] %v335_v54 }
  0x2a   :  { %v337_v56 = vpop.eup %336 }
  0x2b   :  { %188 = vst [vmem:[#allocation1 + $0x10] ss:$2 sm:$0xff] %v337_v56 }
  0x2f   :  { %v185_v60 = vld.sshfl [vmem:[#allocation1] sm:$0xff pattern:$0x75316420]  ;;  %v186_v61 = vld.sshfl [vmem:[#allocation1 + $0x8] sm:$0xff pattern:$0x75316420] }
  0x30   :  { %v195_v62 = vsel %vm121_vm0, %v185_v60, 0.0  ;;  %v202_v63 = vsel %vm121_vm0, %v186_v61, 0.0  ;;  %241 = vst [vmem:[#allocation1] ss:$2 sm:$0xff] %v238_v58 }
  0x31   :  { %v196_v0 = vrot.slane %v195_v62, 4  ;;  %v203_v1 = vrot.slane %v202_v63, 4 }
  0x32   :  { %v189_v2 = vld.sshfl [vmem:[#allocation1 + $0x10] sm:$0xff pattern:$0x75316420]  ;;  %v190_v3 = vld.sshfl [vmem:[#allocation1 + $0x18] sm:$0xff pattern:$0x75316420] }
  0x33   :  { %v197_v4 = vadd.f32 %v196_v0, %v195_v62  ;;  %v204_v5 = vadd.f32 %v203_v1, %v202_v63  ;;  %v209_v6 = vsel %vm121_vm0, %v189_v2, 0.0  ;;  %v216_v7 = vsel %vm121_vm0, %v190_v3, 0.0  ;;  %245 = vst [vmem:[#allocation1 + $0x10] ss:$2 sm:$0xff] %v240_v59 }
  0x34   :  { %v210_v8 = vrot.slane %v209_v6, 4  ;;  %v217_v9 = vrot.slane %v216_v7, 4 }
  0x35   :  { %v198_v10 = vrot.slane %v197_v4, 2  ;;  %v205_v11 = vrot.slane %v204_v5, 2 }
  0x36   :  { %v211_v12 = vadd.f32 %v210_v8, %v209_v6  ;;  %v218_v13 = vadd.f32 %v217_v9, %v216_v7 }
  0x37   :  { %v199_v14 = vadd.f32 %v198_v10, %v197_v4  ;;  %v206_v15 = vadd.f32 %v205_v11, %v204_v5  ;;  %v242_v16 = vld.sshfl [vmem:[#allocation1] sm:$0xff pattern:$0x75316420]  ;;  %v243_v17 = vld.sshfl [vmem:[#allocation1 + $0x8] sm:$0xff pattern:$0x75316420] }
  0x38   :  { %v212_v18 = vrot.slane %v211_v12, 2  ;;  %v219_v19 = vrot.slane %v218_v13, 2  ;;  %v252_v20 = vsel %vm121_vm0, %v242_v16, 0.0  ;;  %v259_v21 = vsel %vm121_vm0, %v243_v17, 0.0 }
  0x39   :  { %v200_v22 = vrot.slane %v199_v14, 1  ;;  %v207_v23 = vrot.slane %v206_v15, 1  ;;  %v253_v24 = vrot.slane %v252_v20, 4  ;;  %v260_v25 = vrot.slane %v259_v21, 4 }
  0x3a   :  { %v213_v26 = vadd.f32 %v212_v18, %v211_v12  ;;  %v220_v27 = vadd.f32 %v219_v19, %v218_v13  ;;  %v246_v28 = vld.sshfl [vmem:[#allocation1 + $0x10] sm:$0xff pattern:$0x75316420]  ;;  %v247_v29 = vld.sshfl [vmem:[#allocation1 + $0x18] sm:$0xff pattern:$0x75316420] }
  0x3b   :  { %v201_v30 = vadd.f32 %v200_v22, %v199_v14  ;;  %v208_v31 = vadd.f32 %v207_v23, %v206_v15  ;;  %v254_v33 = vadd.f32 %v253_v24, %v252_v20  ;;  %v261_v34 = vadd.f32 %v260_v25, %v259_v21 }
  0x3c   :  { %v214_v36 = vrot.slane %v213_v26, 1  ;;  %v221_v38 = vrot.slane %v220_v27, 1  ;;  %v266_v39 = vsel %vm121_vm0, %v246_v28, 0.0  ;;  %v273_v41 = vsel %vm121_vm0, %v247_v29, 0.0 }
  0x3d   :  { %338 = vlog2.f32 %v201_v30  ;;  %v255_v42 = vrot.slane %v254_v33, 2  ;;  %v262_v43 = vrot.slane %v261_v34, 2  ;;  %v267_v44 = vrot.slane %v266_v39, 4 }
  0x3e   :  { %340 = vlog2.f32 %v208_v31  ;;  %v215_v45 = vadd.f32 %v214_v36, %v213_v26  ;;  %v222_v46 = vadd.f32 %v221_v38, %v220_v27  ;;  %v274_v47 = vrot.slane %v273_v41, 4 }
  0x3f   :  { %v268_v48 = vadd.f32 %v267_v44, %v266_v39  ;;  %v256_v49 = vadd.f32 %v255_v42, %v254_v33  ;;  %v263_v50 = vadd.f32 %v262_v43, %v261_v34 }
  0x40   :  { %342 = vlog2.f32 %v215_v45  ;;  %v275_v51 = vadd.f32 %v274_v47, %v273_v41 }
  0x41   :  { %344 = vlog2.f32 %v222_v46  ;;  %v269_v52 = vrot.slane %v268_v48, 2  ;;  %v257_v58 = vrot.slane %v256_v49, 1  ;;  %v264_v59 = vrot.slane %v263_v50, 1 }
  0x42   :  { %v276_v53 = vrot.slane %v275_v51, 2 }
  0x43   :  { %v339_v54 = vpop.eup %338  ;;  %v270_v55 = vadd.f32 %v269_v52, %v268_v48  ;;  %v258_v6 = vadd.f32 %v257_v58, %v256_v49  ;;  %v265_v7 = vadd.f32 %v264_v59, %v263_v50 }
  0x44   :  { %v341_v56 = vpop.eup %340  ;;  %v224_v57 = vmul.f32 0.6931472, %v339_v54  ;;  %v277_v60 = vadd.f32 %v276_v53, %v275_v51 }
  0x45   :  { %v226_v61 = vmul.f32 0.6931472, %v341_v56  ;;  %v271_v62 = vrot.slane %v270_v55, 1 }
  0x46   :  { %v343_v63 = vpop.eup %342  ;;  %v231_v0 = vadd.f32 %v224_v57, %v391_v35  ;;  %v278_v1 = vrot.slane %v277_v60, 1 }
  0x47   :  { %v345_v2 = vpop.eup %344  ;;  %v228_v3 = vmul.f32 0.6931472, %v343_v63  ;;  %v232_v4 = vadd.f32 %v226_v61, %v389_v32  ;;  %v272_v9 = vadd.f32 %v271_v62, %v270_v55  ;;  %v297_v32 = vld [vmem:[%s443_s5] sm:$0x3] }
  0x48   :  { %v230_v5 = vmul.f32 0.6931472, %v345_v2  ;;  %v279_v11 = vadd.f32 %v278_v1, %v277_v60  ;;  %v280_v12 = vmul.f32 %v258_v6, %v231_v0 }
  0x49   :  { %v233_v8 = vadd.f32 %v228_v3, %v398_v40  ;;  %v281_v13 = vmul.f32 %v265_v7, %v232_v4 }
  0x4a   :  { %v234_v10 = vadd.f32 %v230_v5, %v394_v37 }
  0x4b   :  { %v282_v14 = vmul.f32 %v272_v9, %v233_v8  ;;  %v284_v35 = vadd.f32 %v281_v13, %v280_v12 }
  0x4c   :  { %v283_v15 = vmul.f32 %v279_v11, %v234_v10 }
  0x4e   :  { %v285_v16 = vadd.f32 %v283_v15, %v282_v14 }
  0x50   :  { %v301_v17 = vsel %vm300_vm1, %v285_v16, %v284_v35 }
  0x51   :  { %v303_v18 = vadd.f32 %v301_v17, %v297_v32 }
  0x53   :  { %304 = vst [vmem:[%s443_s5] sm:$0x3] %v303_v18 }

</bundles_post_ra>
